<compile_context>
chip_gen: v7x
topology: tpu7x:2x2x1
jax: 0.10.0
libtpu: 0.0.40
codegen_flags: <defaults>
</compile_context>

<pallas_src>
import functools

import jax
import jax.numpy as jnp
from jax import lax
from jax.experimental import pallas as pl
from jax.experimental.pallas import tpu as pltpu


def _round_up(x, m):
    return ((x + m - 1) // m) * m


def gnn_layer_kernel(y_ref, start_ref, end_ref, dfs_ref, df_ref,
                     wh_ref, bh_ref, wo_ref, bo_ref, out_ref, *, n_pass):
    """Single-block kernel: everything resident in VMEM.

    y_ref     : (N, Din)  node features (padded, f32)
    start_ref : (E, 1) int32 source node of each edge (-1 for padding edges)
    end_ref   : (1, E) int32 destination node of each edge (-1 for padding)
    dfs_ref   : (E, 1) f32   degree factors for source nodes (0 for padding)
    df_ref    : (N, 1) f32   degree factors for destination nodes (0 for pad)
    wh_ref    : (Din, Du)    hidden Linear weight (pre-transposed)
    bh_ref    : (1, Du)      hidden Linear bias
    wo_ref    : (Du, Dout)   output Linear weight (pre-transposed)
    bo_ref    : (1, Dout)    output Linear bias
    out_ref   : (N, Dout)
    """
    E = start_ref.shape[0]
    N = y_ref.shape[0]

    # --- incidence matrices, built once (outside the n_pass loop) ----------
    # Gather matrix S (E, N): S[e, n] = dfs[e] if start[e] == n else 0.
    node_iota_en = lax.broadcasted_iota(jnp.int32, (E, N), 1)
    S_scaled = jnp.where(start_ref[...] == node_iota_en, dfs_ref[...],
                         0.0).astype(jnp.bfloat16)          # (E, N)

    # Scatter matrix T (N, E), built directly in (node, edge) orientation so
    # the scatter is a standard lane-contracting matmul:
    # T[n, e] = df[n] if end[e] == n else 0.
    node_iota_ne = lax.broadcasted_iota(jnp.int32, (N, E), 0)
    T_scaled = jnp.where(end_ref[...] == node_iota_ne, df_ref[...],
                         0.0).astype(jnp.bfloat16)          # (N, E)

    def mp_body(_, y):
        # gather + per-edge scale:  msgs[e] = dfs[e] * y[start[e]]
        msgs = jnp.dot(S_scaled, y.astype(jnp.bfloat16),
                       preferred_element_type=jnp.float32)  # (E, Din)
        # scatter-sum + per-node scale:
        #   y'[n] = df[n] * sum_{e: end[e]==n} msgs[e]
        return jnp.dot(T_scaled, msgs.astype(jnp.bfloat16),
                       preferred_element_type=jnp.float32)  # (N, Din)

    y = lax.fori_loop(0, n_pass, mp_body, y_ref[...], unroll=True)

    # U_hidden[0] (Linear) + ReLU   (n_U_layers = 2 -> one hidden layer)
    h = jnp.dot(y, wh_ref[...], preferred_element_type=jnp.float32) + bh_ref[...]
    h = jnp.maximum(h, 0.0)

    # U_output (Linear)
    out_ref[...] = jnp.dot(h, wo_ref[...],
                           preferred_element_type=jnp.float32) + bo_ref[...]


def gnn_layer_forward(y, start_nodes, end_nodes, degree_factors_start,
                      degree_factors, w_hidden, b_hidden, w_out, b_out,
                      n_pass=1):
    """Wrapper mirroring GNN_Layer.forward (scatter_type='sum', n_U_layers=2)."""
    N, dim_in = y.shape
    E = start_nodes.shape[0]
    dim_U = w_hidden.shape[1]
    dim_out = w_out.shape[1]

    # Pad every MXU / lane dimension to a multiple of 128: lane-dense matmuls
    # and an unmasked output store.  Padded edges use index -1 (zero one-hot
    # rows/cols), padded nodes carry zero features / zero degree factors,
    # padded feature columns are zero weights — all sliced off below.
    N_p = _round_up(N, 128)
    E_p = _round_up(E, 128)
    Di_p = _round_up(dim_in, 128)
    Du_p = _round_up(dim_U, 128)
    Do_p = _round_up(dim_out, 128)

    f32 = jnp.float32
    y_p = jnp.zeros((N_p, Di_p), f32).at[:N, :dim_in].set(y.astype(f32))
    start_p = jnp.full((E_p, 1), -1, jnp.int32).at[:E, 0].set(
        start_nodes.astype(jnp.int32))
    end_p = jnp.full((1, E_p), -1, jnp.int32).at[0, :E].set(
        end_nodes.astype(jnp.int32))
    dfs_p = jnp.zeros((E_p, 1), f32).at[:E, :].set(
        degree_factors_start.reshape(E, 1).astype(f32))
    df_p = jnp.zeros((N_p, 1), f32).at[:N, 0].set(
        degree_factors.reshape(N).astype(f32))
    wh_p = jnp.zeros((Di_p, Du_p), f32).at[:dim_in, :dim_U].set(
        w_hidden.astype(f32))
    bh_p = jnp.zeros((1, Du_p), f32).at[:, :dim_U].set(
        b_hidden.reshape(1, dim_U).astype(f32))
    wo_p = jnp.zeros((Du_p, Do_p), f32).at[:dim_U, :dim_out].set(
        w_out.astype(f32))
    bo_p = jnp.zeros((1, Do_p), f32).at[:, :dim_out].set(
        b_out.reshape(1, dim_out).astype(f32))

    kernel = functools.partial(gnn_layer_kernel, n_pass=n_pass)
    vmem = pl.BlockSpec(memory_space=pltpu.MemorySpace.VMEM)

    # Cost hint for XLA's scheduler.
    mp_flops = n_pass * 4 * E_p * N_p * Di_p
    mlp_flops = 2 * N_p * Di_p * Du_p + 2 * N_p * Du_p * Do_p
    io_bytes = 4 * (y_p.size + start_p.size + end_p.size + dfs_p.size
                    + df_p.size + wh_p.size + bh_p.size + wo_p.size
                    + bo_p.size + N_p * Do_p)
    cost = pl.CostEstimate(flops=mp_flops + mlp_flops, transcendentals=0,
                           bytes_accessed=io_bytes)

    # Shape-derived scoped-VMEM request (capped at 64 MiB so it is legal on
    # all of v5e / v6e / v7x; v5e's default scoped limit is only 16 MiB).
    scratch_bytes = (2 * E_p * N_p * 2          # bf16 incidence matrices
                     + 2 * E_p * N_p * 4        # int32 iotas / compare temps
                     + E_p * Di_p * (4 + 2)     # msgs f32 + bf16 copy
                     + N_p * Di_p * (4 + 2)     # y carry f32 + bf16 copy
                     + N_p * Du_p * 4)          # hidden activations
    vmem_limit = min(max(2 * (io_bytes + scratch_bytes), 32 * 1024 * 1024),
                     64 * 1024 * 1024)

    out_p = pl.pallas_call(
        kernel,
        out_shape=jax.ShapeDtypeStruct((N_p, Do_p), jnp.float32),
        in_specs=[vmem] * 9,
        out_specs=vmem,
        compiler_params=pltpu.CompilerParams(vmem_limit_bytes=vmem_limit),
        cost_estimate=cost,
    )(y_p, start_p, end_p, dfs_p, df_p, wh_p, bh_p, wo_p, bo_p)

    out = out_p[:N, :dim_out]
    # Forward returns the projected features plus pass-through graph data,
    # matching the PyTorch module's tuple return.
    return out, start_nodes, end_nodes, degree_factors_start, degree_factors


def ref_forward(y, start_nodes, end_nodes, dfs, df, wh, bh, wo, bo, n_pass, N):
    """Plain-JAX f32 reference (scatter_sum == segment_sum)."""
    for _ in range(n_pass):
        msgs = y[start_nodes] * dfs
        y = jax.ops.segment_sum(msgs, end_nodes, num_segments=N) * df
    h = jnp.maximum(y @ wh + bh, 0.0)
    return h @ wo + bo


if __name__ == "__main__":
    key = jax.random.PRNGKey(0)
    k_y, k_s, k_e, k_dfs, k_df, k_wh, k_bh, k_wo, k_bo = jax.random.split(key, 9)

    # Small synthetic graph consistent with the module's forward signature.
    N = 16          # number of nodes
    E = 48          # number of edges
    dim_in = 8
    dim_U = 32
    dim_out = 8
    n_pass = 1      # module default

    y = jax.random.normal(k_y, (N, dim_in), dtype=jnp.float32)
    start_nodes = jax.random.randint(k_s, (E,), 0, N, dtype=jnp.int32)
    end_nodes = jax.random.randint(k_e, (E,), 0, N, dtype=jnp.int32)
    degree_factors_start = jax.random.uniform(
        k_dfs, (E, 1), minval=0.2, maxval=1.0, dtype=jnp.float32)
    degree_factors = jax.random.uniform(
        k_df, (N, 1), minval=0.2, maxval=1.0, dtype=jnp.float32)

    # Deterministic parameter init (Linear weights stored pre-transposed
    # as (in_features, out_features) so the kernel does y @ W + b).
    w_hidden = jax.random.normal(k_wh, (dim_in, dim_U), dtype=jnp.float32) * 0.1
    b_hidden = jax.random.normal(k_bh, (1, dim_U), dtype=jnp.float32) * 0.1
    w_out = jax.random.normal(k_wo, (dim_U, dim_out), dtype=jnp.float32) * 0.1
    b_out = jax.random.normal(k_bo, (1, dim_out), dtype=jnp.float32) * 0.1

    out, s, e, dfs, df = gnn_layer_forward(
        y, start_nodes, end_nodes, degree_factors_start, degree_factors,
        w_hidden, b_hidden, w_out, b_out, n_pass=n_pass)
    jax.block_until_ready(out)

    ref = ref_forward(y, start_nodes, end_nodes, degree_factors_start,
                      degree_factors, w_hidden, b_hidden, w_out, b_out,
                      n_pass, N)
    assert out.shape == (N, dim_out)
    # bf16 MXU operands (f32 accumulation) in the message passing -> ~0.5-1%
    # relative error vs. the pure-f32 reference.
    assert jnp.allclose(out, ref, rtol=2e-2, atol=2e-2), "mismatch vs reference"

    print("KERNEL_OK")
</pallas_src>

<mosaic_0001>
module attributes {stable_mosaic.version = 11 : i64} {
  func.func @gnn_layer_kernel(%arg0: memref<128x128xf32, #tpu.memory_space<vmem>>, %arg1: memref<128x1xi32, #tpu.memory_space<vmem>>, %arg2: memref<1x128xi32, #tpu.memory_space<vmem>>, %arg3: memref<128x1xf32, #tpu.memory_space<vmem>>, %arg4: memref<128x1xf32, #tpu.memory_space<vmem>>, %arg5: memref<128x128xf32, #tpu.memory_space<vmem>>, %arg6: memref<1x128xf32, #tpu.memory_space<vmem>>, %arg7: memref<128x128xf32, #tpu.memory_space<vmem>>, %arg8: memref<1x128xf32, #tpu.memory_space<vmem>>, %arg9: memref<128x128xf32, #tpu.memory_space<vmem>>) attributes {dimension_semantics = [], scalar_prefetch = 0 : i64, scratch_operands = 0 : i64, tpu.core_type = #tpu.core_type<tc>} {
    %0 = tpu.iota {dimensions = array<i32: 1>} : vector<128x128xi32>
    %c0 = arith.constant 0 : index
    %c0_0 = arith.constant 0 : index
    %1 = vector.load %arg1[%c0, %c0_0] : memref<128x1xi32, #tpu.memory_space<vmem>>, vector<128x1xi32>
    %2 = vector.broadcast %1 : vector<128x1xi32> to vector<128x128xi32>
    %3 = arith.cmpi eq, %2, %0 : vector<128x128xi32>
    %c0_1 = arith.constant 0 : index
    %c0_2 = arith.constant 0 : index
    %4 = vector.load %arg3[%c0_1, %c0_2] : memref<128x1xf32, #tpu.memory_space<vmem>>, vector<128x1xf32>
    %cst = arith.constant 0.000000e+00 : f32
    %5 = vector.shape_cast %4 : vector<128x1xf32> to vector<128x1xf32>
    %6 = vector.broadcast %5 : vector<128x1xf32> to vector<128x128xf32>
    %7 = vector.broadcast %cst : f32 to vector<128x128xf32>
    %8 = arith.select %3, %6, %7 : vector<128x128xi1>, vector<128x128xf32>
    %9 = arith.truncf %8 : vector<128x128xf32> to vector<128x128xbf16>
    %10 = tpu.iota {dimensions = array<i32: 0>} : vector<128x128xi32>
    %c0_3 = arith.constant 0 : index
    %c0_4 = arith.constant 0 : index
    %11 = vector.load %arg2[%c0_3, %c0_4] : memref<1x128xi32, #tpu.memory_space<vmem>>, vector<1x128xi32>
    %12 = vector.broadcast %11 : vector<1x128xi32> to vector<128x128xi32>
    %13 = arith.cmpi eq, %12, %10 : vector<128x128xi32>
    %c0_5 = arith.constant 0 : index
    %c0_6 = arith.constant 0 : index
    %14 = vector.load %arg4[%c0_5, %c0_6] : memref<128x1xf32, #tpu.memory_space<vmem>>, vector<128x1xf32>
    %cst_7 = arith.constant 0.000000e+00 : f32
    %15 = vector.shape_cast %14 : vector<128x1xf32> to vector<128x1xf32>
    %16 = vector.broadcast %15 : vector<128x1xf32> to vector<128x128xf32>
    %17 = vector.broadcast %cst_7 : f32 to vector<128x128xf32>
    %18 = arith.select %13, %16, %17 : vector<128x128xi1>, vector<128x128xf32>
    %19 = arith.truncf %18 : vector<128x128xf32> to vector<128x128xbf16>
    %c0_8 = arith.constant 0 : index
    %c0_9 = arith.constant 0 : index
    %20 = vector.load %arg0[%c0_8, %c0_9] : memref<128x128xf32, #tpu.memory_space<vmem>>, vector<128x128xf32>
    %c0_i32 = arith.constant 0 : i32
    %21 = arith.truncf %20 : vector<128x128xf32> to vector<128x128xbf16>
    %cst_10 = arith.constant dense<0.000000e+00> : vector<128x128xf32>
    %22 = tpu.matmul %9, %21, %cst_10 {dimension_numbers = #tpu.dot_dimension_numbers<[1], [0], [0], [1], [0, 0, 1, 1], [], []>} : vector<128x128xbf16>, vector<128x128xbf16>, vector<128x128xf32> -> vector<128x128xf32>
    %23 = arith.truncf %22 : vector<128x128xf32> to vector<128x128xbf16>
    %cst_11 = arith.constant dense<0.000000e+00> : vector<128x128xf32>
    %24 = tpu.matmul %19, %23, %cst_11 {dimension_numbers = #tpu.dot_dimension_numbers<[1], [0], [0], [1], [0, 0, 1, 1], [], []>} : vector<128x128xbf16>, vector<128x128xbf16>, vector<128x128xf32> -> vector<128x128xf32>
    %c0_12 = arith.constant 0 : index
    %c0_13 = arith.constant 0 : index
    %25 = vector.load %arg5[%c0_12, %c0_13] : memref<128x128xf32, #tpu.memory_space<vmem>>, vector<128x128xf32>
    %cst_14 = arith.constant dense<0.000000e+00> : vector<128x128xf32>
    %26 = tpu.matmul %24, %25, %cst_14 {dimension_numbers = #tpu.dot_dimension_numbers<[1], [0], [0], [1], [0, 0, 1, 1], [], []>} : vector<128x128xf32>, vector<128x128xf32>, vector<128x128xf32> -> vector<128x128xf32>
    %c0_15 = arith.constant 0 : index
    %c0_16 = arith.constant 0 : index
    %27 = vector.load %arg6[%c0_15, %c0_16] : memref<1x128xf32, #tpu.memory_space<vmem>>, vector<1x128xf32>
    %28 = vector.broadcast %27 : vector<1x128xf32> to vector<128x128xf32>
    %29 = arith.addf %26, %28 : vector<128x128xf32>
    %cst_17 = arith.constant 0.000000e+00 : f32
    %30 = vector.broadcast %cst_17 : f32 to vector<128x128xf32>
    %31 = arith.maximumf %29, %30 : vector<128x128xf32>
    %c0_18 = arith.constant 0 : index
    %c0_19 = arith.constant 0 : index
    %32 = vector.load %arg7[%c0_18, %c0_19] : memref<128x128xf32, #tpu.memory_space<vmem>>, vector<128x128xf32>
    %cst_20 = arith.constant dense<0.000000e+00> : vector<128x128xf32>
    %33 = tpu.matmul %31, %32, %cst_20 {dimension_numbers = #tpu.dot_dimension_numbers<[1], [0], [0], [1], [0, 0, 1, 1], [], []>} : vector<128x128xf32>, vector<128x128xf32>, vector<128x128xf32> -> vector<128x128xf32>
    %c0_21 = arith.constant 0 : index
    %c0_22 = arith.constant 0 : index
    %34 = vector.load %arg8[%c0_21, %c0_22] : memref<1x128xf32, #tpu.memory_space<vmem>>, vector<1x128xf32>
    %35 = vector.broadcast %34 : vector<1x128xf32> to vector<128x128xf32>
    %36 = arith.addf %33, %35 : vector<128x128xf32>
    %c0_23 = arith.constant 0 : index
    %c0_24 = arith.constant 0 : index
    %37 = vector.load %arg9[%c0_23, %c0_24] : memref<128x128xf32, #tpu.memory_space<vmem>>, vector<128x128xf32>
    tpu.vector_store %arg9[%c0_23, %c0_24], %36 {strides = array<i32>} : memref<128x128xf32, #tpu.memory_space<vmem>>, vector<128x128xf32>,
    return
  }
}

</mosaic_0001>

<bundles_post_ra>
// kernel: tpu_custom_call.1
= control target key start
LH: loop header
LB: loop body
LE: loop exit
PB: predicated region body
PF: predicated region fallthrough
CT: control target
= control target key end

     0   :  { %v1501_v3 = vmov 0   ;;  %s1920_s0 = inlined_call_operand.vmem [shape: f32[128,128], index: 0, kind: input, shape index: {}]   ;;  %s1921_s1 = inlined_call_operand.vmem [shape: s32[128,1], index: 1, kind: input, shape index: {}]   ;;  %s1922_s2 = inlined_call_operand.vmem [shape: s32[1,128], index: 2, kind: input, shape index: {}]   ;;  %s1923_s3 = inlined_call_operand.vmem [shape: f32[128,1], index: 3, kind: input, shape index: {}]   ;;  %s1924_s4 = inlined_call_operand.vmem [shape: f32[128,1], index: 4, kind: input, shape index: {}]   ;;  %s1925_s5 = inlined_call_operand.vmem [shape: f32[128,128], index: 5, kind: input, shape index: {}]   ;;  %s1926_s6 = inlined_call_operand.vmem [shape: f32[1,128], index: 6, kind: input, shape index: {}]   ;;  %s1927_s7 = inlined_call_operand.vmem [shape: f32[128,128], index: 7, kind: input, shape index: {}]   ;;  %s1928_s8 = inlined_call_operand.vmem [shape: f32[1,128], index: 8, kind: input, shape index: {}]   ;;  %s1929_s9 = inlined_call_operand.hbm [shape: f32[128,128], index: 9, kind: output, shape index: {}]  }
   0x1   :  { %v36_v0 = vld [vmem:[%s1921_s1] sm:$0xff]  ;;  %v117_v2 = vld [vmem:[%s1923_s3 + $0x8] sm:$0xff]  ;;  %1395 = vset.pattern.permute.xlu0 %v1501_v3  ;;  %1396 = vset.pattern.permute.xlu1 %v1501_v3  ;;  %v38_v6 = vld [vmem:[%s1921_s1 + $0x10] sm:$0xff] }
   0x2   :  { %v116_v1 = vld [vmem:[%s1923_s3] sm:$0xff]  ;;  %53 = vperm.xlu0 %1395, %v36_v0   ;;  %v37_v5 = vld [vmem:[%s1921_s1 + $0x8] sm:$0xff]  ;;  %v118_v7 = vld [vmem:[%s1923_s3 + $0x10] sm:$0xff] }
   0x3   :  { %v1397_v4 = vpack.i.bf16 %v117_v2, %v116_v1  ;;  %v119_v8 = vld [vmem:[%s1923_s3 + $0x18] sm:$0xff]  ;;  %v40_v11 = vld [vmem:[%s1921_s1 + $0x20] sm:$0xff]  ;;  %v121_v13 = vld [vmem:[%s1923_s3 + $0x28] sm:$0xff] }
   0x4   :  { %v39_v9 = vld [vmem:[%s1921_s1 + $0x18] sm:$0xff]  ;;  %v1402_v10 = vpack.i.bf16 %v119_v8, %v118_v7  ;;  %v120_v12 = vld [vmem:[%s1923_s3 + $0x20] sm:$0xff]  ;;  %v41_v14 = vld [vmem:[%s1921_s1 + $0x28] sm:$0xff] }
   0x5   :  { %1398 = vperm.xlu1 %1396, %v1397_v4   ;;  %v1407_v15 = vpack.i.bf16 %v121_v13, %v120_v12  ;;  %v42_v16 = vld [vmem:[%s1921_s1 + $0x30] sm:$0xff]  ;;  %v123_v18 = vld [vmem:[%s1923_s3 + $0x38] sm:$0xff]  ;;  %v394_v19 = vld [vmem:[%s1920_s0] sm:$0xff] }
   0x6   :  { %56 = vperm.xlu0 %1395, %v37_v5   ;;  %v122_v17 = vld [vmem:[%s1923_s3 + $0x30] sm:$0xff]  ;;  %v395_v20 = vld [vmem:[%s1920_s0 + $0x8] sm:$0xff]  ;;  %v397_v23 = vld [vmem:[%s1920_s0 + $0x18] sm:$0xff] }
   0x7   :  { %v396_v21 = vld [vmem:[%s1920_s0 + $0x10] sm:$0xff]  ;;  %v410_v22 = vpack.c.bf16 %v395_v20, %v394_v19  ;;  %v398_v25 = vld [vmem:[%s1920_s0 + $0x20] sm:$0xff]  ;;  %v399_v26 = vld [vmem:[%s1920_s0 + $0x28] sm:$0xff]  ;;  %v1412_v28 = vpack.i.bf16 %v123_v18, %v122_v17 }
   0x8   :  { %v411_v24 = vpack.c.bf16 %v397_v23, %v396_v21  ;;  %v43_v27 = vld [vmem:[%s1921_s1 + $0x38] sm:$0xff]  ;;  %v412_v29 = vpack.c.bf16 %v399_v26, %v398_v25 }
   0x9   :  { %59 = vperm.xlu1 %1396, %v38_v6   ;;  %1151 = vmatprep.subr.bf16.mxu0 %v410_v22 }
   0xa   :  { %62 = vperm.xlu0 %1395, %v39_v9   ;;  %1152 = vmatpush3.bf16.msra.mxu0 %v410_v22 }
   0xb   :  { %1153 = vmatprep.subr.bf16.mxu0 %v411_v24 }
   0xd   :  { %1403 = vperm.xlu1 %1396, %v1402_v10  }
   0xe   :  { %65 = vperm.xlu0 %1395, %v40_v11  }
  0x11   :  { %68 = vperm.xlu1 %1396, %v41_v14  }
  0x12   :  { %1408 = vperm.xlu0 %1395, %v1407_v15  }
  0x15   :  { %71 = vperm.xlu1 %1396, %v42_v16  }
  0x16   :  { %14 = vsyncpa [#allocation3], 0  ;;  %74 = vperm.xlu0 %1395, %v43_v27   ;;  %v400_v30 = vld [vmem:[%s1920_s0 + $0x30] sm:$0xff]  ;;  %v401_v31 = vld [vmem:[%s1920_s0 + $0x38] sm:$0xff]  ;;  %1154 = vmatpush3.bf16.msra.mxu0 %v411_v24  ;;  %v34_v25 = vlaneseq }
  0x17   :  { %v44_v32 = vld [vmem:[%s1921_s1 + $0x40] sm:$0xff]  ;;  %v125_v34 = vld [vmem:[%s1923_s3 + $0x48] sm:$0xff]  ;;  %1155 = vmatprep.subr.bf16.mxu0 %v412_v29  ;;  %v413_v36 = vpack.c.bf16 %v401_v31, %v400_v30  ;;  %v46_v40 = vld [vmem:[%s1921_s1 + $0x50] sm:$0xff] }
  0x18   :  { %v124_v33 = vld [vmem:[%s1923_s3 + $0x40] sm:$0xff]  ;;  %v45_v35 = vld [vmem:[%s1921_s1 + $0x48] sm:$0xff]  ;;  %v126_v41 = vld [vmem:[%s1923_s3 + $0x50] sm:$0xff]  ;;  %v1748_v26 = vand.u32 127, %v34_v25 }
  0x19   :  { %1413 = vperm.xlu1 %1396, %v1412_v28   ;;  %v1417_v37 = vpack.i.bf16 %v125_v34, %v124_v33  ;;  %v402_v38 = vld [vmem:[%s1920_s0 + $0x40] sm:$0xff]  ;;  %v403_v39 = vld [vmem:[%s1920_s0 + $0x48] sm:$0xff]  ;;  %v127_v42 = vld [vmem:[%s1923_s3 + $0x58] sm:$0xff] }
  0x1a   :  { %77 = vperm.xlu0 %1395, %v44_v32   ;;  %1156 = vmatpush3.bf16.msra.mxu0 %v412_v29  ;;  %v414_v43 = vpack.c.bf16 %v403_v39, %v402_v38  ;;  %v404_v44 = vld [vmem:[%s1920_s0 + $0x50] sm:$0xff]  ;;  %v405_v45 = vld [vmem:[%s1920_s0 + $0x58] sm:$0xff]  ;;  %v1422_v47 = vpack.i.bf16 %v127_v42, %v126_v41  ;;  %v406_v49 = vld [vmem:[%s1920_s0 + $0x60] sm:$0xff] }
  0x1b   :  { %1157 = vmatprep.subr.bf16.mxu0 %v413_v36  ;;  %v47_v46 = vld [vmem:[%s1921_s1 + $0x58] sm:$0xff]  ;;  %v415_v48 = vpack.c.bf16 %v405_v45, %v404_v44  ;;  %v407_v50 = vld [vmem:[%s1920_s0 + $0x68] sm:$0xff]  ;;  %v48_v51 = vld [vmem:[%s1921_s1 + $0x60] sm:$0xff] }
  0x1c   :  { %v128_v52 = vld [vmem:[%s1923_s3 + $0x60] sm:$0xff]  ;;  %v129_v53 = vld [vmem:[%s1923_s3 + $0x68] sm:$0xff]  ;;  %v416_v55 = vpack.c.bf16 %v407_v50, %v406_v49  ;;  %v408_v57 = vld [vmem:[%s1920_s0 + $0x70] sm:$0xff] }
  0x1d   :  { %80 = vperm.xlu1 %1396, %v45_v35   ;;  %v49_v54 = vld [vmem:[%s1921_s1 + $0x68] sm:$0xff]  ;;  %v1427_v56 = vpack.i.bf16 %v129_v53, %v128_v52  ;;  %v409_v58 = vld [vmem:[%s1920_s0 + $0x78] sm:$0xff]  ;;  %v50_v59 = vld [vmem:[%s1921_s1 + $0x70] sm:$0xff] }
  0x1e   :  { %1418 = vperm.xlu0 %1395, %v1417_v37   ;;  %1158 = vmatpush3.bf16.msra.mxu0 %v413_v36  ;;  %v130_v60 = vld [vmem:[%s1923_s3 + $0x70] sm:$0xff]  ;;  %v131_v61 = vld [vmem:[%s1923_s3 + $0x78] sm:$0xff]  ;;  %v417_v62 = vpack.c.bf16 %v409_v58, %v408_v57  ;;  %v274_v1 = vld [vmem:[%s1924_s4] sm:$0xff] }
  0x1f   :  { %1159 = vmatprep.subr.bf16.mxu0 %v414_v43  ;;  %v51_v63 = vld [vmem:[%s1921_s1 + $0x78] sm:$0xff]  ;;  %v1432_v0 = vpack.i.bf16 %v131_v61, %v130_v60  ;;  %v275_v2 = vld [vmem:[%s1924_s4 + $0x8] sm:$0xff]  ;;  %v276_v3 = vld [vmem:[%s1924_s4 + $0x10] sm:$0xff] }
  0x20   :  { %v277_v4 = vld [vmem:[%s1924_s4 + $0x18] sm:$0xff]  ;;  %v1437_v5 = vpack.i.bf16 %v275_v2, %v274_v1  ;;  %v278_v7 = vld [vmem:[%s1924_s4 + $0x20] sm:$0xff]  ;;  %v279_v8 = vld [vmem:[%s1924_s4 + $0x28] sm:$0xff]  ;;  %v1763_v1 = vshrl.u32 %v34_v25, 7 }
  0x21   :  { %83 = vperm.xlu1 %1396, %v46_v40   ;;  %v1442_v6 = vpack.i.bf16 %v277_v4, %v276_v3  ;;  %v280_v9 = vld [vmem:[%s1924_s4 + $0x30] sm:$0xff]  ;;  %v281_v10 = vld [vmem:[%s1924_s4 + $0x38] sm:$0xff]  ;;  %v1447_v11 = vpack.i.bf16 %v279_v8, %v278_v7  ;;  %v282_v13 = vld [vmem:[%s1924_s4 + $0x40] sm:$0xff] }
  0x22   :  { %86 = vperm.xlu0 %1395, %v47_v46   ;;  %1160 = vmatpush3.bf16.msra.mxu0 %v414_v43  ;;  %v1452_v12 = vpack.i.bf16 %v281_v10, %v280_v9  ;;  %v283_v14 = vld [vmem:[%s1924_s4 + $0x48] sm:$0xff]  ;;  %v284_v15 = vld [vmem:[%s1924_s4 + $0x50] sm:$0xff]  ;;  %v285_v16 = vld [vmem:[%s1924_s4 + $0x58] sm:$0xff]  ;;  %v238_v7 = vadd.s32 8, %v1763_v1 }
  0x23   :  { %1161 = vmatprep.subr.bf16.mxu0 %v415_v48  ;;  %v1457_v17 = vpack.i.bf16 %v283_v14, %v282_v13  ;;  %v1462_v18 = vpack.i.bf16 %v285_v16, %v284_v15  ;;  %v286_v19 = vld [vmem:[%s1924_s4 + $0x60] sm:$0xff]  ;;  %v287_v20 = vld [vmem:[%s1924_s4 + $0x68] sm:$0xff]  ;;  %v288_v21 = vld [vmem:[%s1924_s4 + $0x70] sm:$0xff] }
  0x24   :  { %v289_v22 = vld [vmem:[%s1924_s4 + $0x78] sm:$0xff]  ;;  %v1467_v23 = vpack.i.bf16 %v287_v20, %v286_v19  ;;  %v1771_v9 = vld [vmem:[%s1922_s2] ss:$0 sm:$0xff]  ;;  %v621_v19 = vld [vmem:[%s1925_s5 + $0x8] sm:$0xff] }
  0x25   :  { %1423 = vperm.xlu1 %1396, %v1422_v47   ;;  %v1472_v24 = vpack.i.bf16 %v289_v22, %v288_v21  ;;  %v622_v20 = vld [vmem:[%s1925_s5 + $0x10] sm:$0xff]  ;;  %v623_v22 = vld [vmem:[%s1925_s5 + $0x18] sm:$0xff]  ;;  %v625_v25 = vld [vmem:[%s1925_s5 + $0x28] sm:$0xff] }
  0x26   :  { %89 = vperm.xlu0 %1395, %v48_v51   ;;  %1162 = vmatpush3.bf16.msra.mxu0 %v415_v48 }
  0x27   :  { %1163 = vmatprep.subr.bf16.mxu0 %v416_v55 }
  0x29   :  { %92 = vperm.xlu1 %1396, %v49_v54  }
  0x2a   :  { %1428 = vperm.xlu0 %1395, %v1427_v56   ;;  %1164 = vmatpush3.bf16.msra.mxu0 %v416_v55 }
  0x2b   :  { %1165 = vmatprep.subr.bf16.mxu0 %v417_v62 }
  0x2d   :  { %95 = vperm.xlu1 %1396, %v50_v59  }
  0x2e   :  { %98 = vperm.xlu0 %1395, %v51_v63   ;;  %1166 = vmatpush3.bf16.msra.mxu0 %v417_v62 }
  0x31   :  { %1433 = vperm.xlu1 %1396, %v1432_v0  }
  0x32   :  { %1438 = vperm.xlu0 %1395, %v1437_v5  }
  0x35   :  { %1443 = vperm.xlu1 %1396, %v1442_v6  }
  0x36   :  { %1448 = vperm.xlu0 %1395, %v1447_v11  }
  0x39   :  { %1453 = vperm.xlu1 %1396, %v1452_v12  }
  0x3a   :  { %1458 = vperm.xlu0 %1395, %v1457_v17  }
  0x3d   :  { %1463 = vperm.xlu1 %1396, %v1462_v18   ;;  %v620_v18 = vld [vmem:[%s1925_s5] sm:$0xff] }
  0x3e   :  { %1468 = vperm.xlu0 %1395, %v1467_v23   ;;  %v1327_v21 = vpack.c.bf16 %v621_v19, %v620_v18  ;;  %v1331_v23 = vpack.c.bf16 %v623_v22, %v622_v20  ;;  %v245_v19 = vadd.s32 64, %v1763_v1  ;;  %v246_v20 = vadd.s32 72, %v1763_v1 }
  0x40   :  { %1328 = vmatprep.subr.bf16.mxu0 %v1327_v21 }
  0x41   :  { %1473 = vperm.xlu1 %1396, %v1472_v24   ;;  %v624_v24 = vld [vmem:[%s1925_s5 + $0x20] sm:$0xff] }
  0x81   :  { %v54_v27 = vpop.permute.xlu0 %53 }
  0x82   :  { %vm100_vm0 = vcmp.eq.s32.totalorder %v54_v27, %v1748_v26  ;;  %v626_v27 = vld [vmem:[%s1925_s5 + $0x30] sm:$0xff] }
  0x84   :  { %v1399_v28 = vpop.permute.xlu1 %1398 }
  0x85   :  { %v1401_v29 = vunpack.i.h.bf16 %v1399_v28  ;;  %v1400_v30 = vunpack.i.l.bf16 %v1399_v28  ;;  %v57_v31 = vpop.permute.xlu0 %56  ;;  %v627_v28 = vld [vmem:[%s1925_s5 + $0x38] sm:$0xff] }
  0x86   :  { %vm101_vm1 = vcmp.eq.s32.totalorder %v57_v31, %v1748_v26  ;;  %v629_v31 = vld [vmem:[%s1925_s5 + $0x48] sm:$0xff] }
  0x87   :  { %v1006_v32 = vpack.c.bf16 %v1401_v29, %v1400_v30  ;;  %vm1005_vm2 = vmpackc.low %vm101_vm1, %vm100_vm0  ;;  %v1339_v29 = vpack.c.bf16 %v627_v28, %v626_v27  ;;  %v628_v30 = vld [vmem:[%s1925_s5 + $0x40] sm:$0xff]  ;;  %v247_v27 = vadd.s32 80, %v1763_v1  ;;  %v248_v28 = vadd.s32 88, %v1763_v1 }
  0x88   :  { %v60_v33 = vpop.permute.xlu1 %59 }
  0x89   :  { %1167 = vmatprep.mubr.msk.bf16.mxu0 %vm1005_vm2, %v1006_v32  ;;  %v63_v34 = vpop.permute.xlu0 %62  ;;  %vm102_vm4 = vcmp.eq.s32.totalorder %v60_v33, %v1748_v26  ;;  %v1343_v32 = vpack.c.bf16 %v629_v31, %v628_v30  ;;  %v630_v33 = vld [vmem:[%s1925_s5 + $0x50] sm:$0xff]  ;;  %v249_v31 = vadd.s32 96, %v1763_v1 }
  0x8a   :  { %vm103_vm3 = vcmp.eq.s32.totalorder %v63_v34, %v1748_v26  ;;  %v631_v34 = vld [vmem:[%s1925_s5 + $0x58] sm:$0xff] }
  0x8b   :  { %vm1008_vm5 = vmpackc.low %vm103_vm3, %vm102_vm4 }
  0x8c   :  { %v1404_v35 = vpop.permute.xlu1 %1403 }
  0x8d   :  { %v1406_v36 = vunpack.i.h.bf16 %v1404_v35  ;;  %v1405_v37 = vunpack.i.l.bf16 %v1404_v35  ;;  %v66_v39 = vpop.permute.xlu0 %65  ;;  %v1347_v35 = vpack.c.bf16 %v631_v34, %v630_v33 }
  0x8e   :  { %vm104_vm6 = vcmp.eq.s32.totalorder %v66_v39, %v1748_v26  ;;  %v634_v39 = vld [vmem:[%s1925_s5 + $0x70] sm:$0xff] }
  0x8f   :  { %v1009_v38 = vpack.c.bf16 %v1406_v36, %v1405_v37  ;;  %v632_v36 = vld [vmem:[%s1925_s5 + $0x60] sm:$0xff]  ;;  %v633_v37 = vld [vmem:[%s1925_s5 + $0x68] sm:$0xff] }
  0x90   :  { %v69_v40 = vpop.permute.xlu1 %68 }
  0x91   :  { %1168 = vmatmul.mubr.msk.bf16.vlgmr.msra.gmra.mrb[0].mxu0 %vm1008_vm5, %v1009_v38  ;;  %v1409_v41 = vpop.permute.xlu0 %1408  ;;  %vm105_vm7 = vcmp.eq.s32.totalorder %v69_v40, %v1748_v26  ;;  %v1351_v38 = vpack.c.bf16 %v633_v37, %v632_v36  ;;  %v635_v40 = vld [vmem:[%s1925_s5 + $0x78] sm:$0xff] }
  0x92   :  { %v1411_v42 = vunpack.i.h.bf16 %v1409_v41  ;;  %v1410_v43 = vunpack.i.l.bf16 %v1409_v41  ;;  %vm1011_vm8 = vmpackc.low %vm105_vm7, %vm104_vm6  ;;  %vm258_vm6 = vcmp.eq.s32.totalorder %v1771_v9, %v1763_v1  ;;  %vm259_vm7 = vcmp.eq.s32.totalorder %v1771_v9, %v238_v7  ;;  %1330 = vmatpush3.bf16.msra.mxu0 %v1327_v21 }
  0x93   :  { %1332 = vmatprep.subr.bf16.mxu0 %v1331_v23  ;;  %v1355_v41 = vpack.c.bf16 %v635_v40, %v634_v39  ;;  %v242_v7 = vadd.s32 40, %v1763_v1  ;;  %v251_v39 = vadd.s32 112, %v1763_v1  ;;  %v252_v40 = vadd.s32 120, %v1763_v1 }
  0x94   :  { %v72_v44 = vpop.permute.xlu1 %71  ;;  %v1012_v45 = vpack.c.bf16 %v1411_v42, %v1410_v43 }
  0x95   :  { %v75_v46 = vpop.permute.xlu0 %74  ;;  %vm106_vm10 = vcmp.eq.s32.totalorder %v72_v44, %v1748_v26 }
  0x96   :  { %1171 = vmatprep.mubr.msk.bf16.mxu0 %vm1011_vm8, %v1012_v45  ;;  %vm107_vm9 = vcmp.eq.s32.totalorder %v75_v46, %v1748_v26  ;;  %1334 = vmatpush3.bf16.msra.mxu0 %v1331_v23 }
  0x97   :  { %vm1014_vm11 = vmpackc.low %vm107_vm9, %vm106_vm10 }
  0x98   :  { %v1414_v47 = vpop.permute.xlu1 %1413  ;;  %vm1029_vm10 = vmpackc.low %vm259_vm7, %vm258_vm6  ;;  %vm268_vm7 = vcmp.eq.s32.totalorder %v1771_v9, %v247_v27 }
  0x99   :  { %v1416_v48 = vunpack.i.h.bf16 %v1414_v47  ;;  %v1415_v49 = vunpack.i.l.bf16 %v1414_v47  ;;  %v78_v51 = vpop.permute.xlu0 %77 }
  0x9a   :  { %vm108_vm12 = vcmp.eq.s32.totalorder %v78_v51, %v1748_v26 }
  0x9b   :  { %v1015_v50 = vpack.c.bf16 %v1416_v48, %v1415_v49 }
  0x9c   :  { %v81_v52 = vpop.permute.xlu1 %80 }
  0x9d   :  { %1172 = vmatmul.mubr.msk.bf16.gmra.mrb[4].mxu0 %vm1014_vm11, %v1015_v50  ;;  %v1419_v53 = vpop.permute.xlu0 %1418  ;;  %vm109_vm13 = vcmp.eq.s32.totalorder %v81_v52, %v1748_v26 }
  0x9e   :  { %v1421_v54 = vunpack.i.h.bf16 %v1419_v53  ;;  %v1420_v55 = vunpack.i.l.bf16 %v1419_v53  ;;  %vm1017_vm14 = vmpackc.low %vm109_vm13, %vm108_vm12 }
  0xa0   :  { %v84_v56 = vpop.permute.xlu1 %83  ;;  %v1018_v57 = vpack.c.bf16 %v1421_v54, %v1420_v55 }
  0xa1   :  { %v87_v58 = vpop.permute.xlu0 %86  ;;  %vm110_vm0 = vcmp.eq.s32.totalorder %v84_v56, %v1748_v26 }
  0xa2   :  { %1175 = vmatprep.mubr.msk.bf16.mxu0 %vm1017_vm14, %v1018_v57  ;;  %vm111_vm15 = vcmp.eq.s32.totalorder %v87_v58, %v1748_v26  ;;  %vm263_vm14 = vcmp.eq.s32.totalorder %v1771_v9, %v242_v7 }
  0xa3   :  { %vm1020_vm1 = vmpackc.low %vm111_vm15, %vm110_vm0 }
  0xa4   :  { %v1424_v59 = vpop.permute.xlu1 %1423 }
  0xa5   :  { %v1426_v60 = vunpack.i.h.bf16 %v1424_v59  ;;  %v1425_v61 = vunpack.i.l.bf16 %v1424_v59  ;;  %v90_v63 = vpop.permute.xlu0 %89 }
  0xa6   :  { %vm112_vm2 = vcmp.eq.s32.totalorder %v90_v63, %v1748_v26 }
  0xa7   :  { %v1021_v62 = vpack.c.bf16 %v1426_v60, %v1425_v61 }
  0xa8   :  { %v93_v0 = vpop.permute.xlu1 %92 }
  0xa9   :  { %1176 = vmatmul.mubr.msk.bf16.gmra.mrb[8].mxu0 %vm1020_vm1, %v1021_v62  ;;  %v1429_v2 = vpop.permute.xlu0 %1428  ;;  %vm113_vm3 = vcmp.eq.s32.totalorder %v93_v0, %v1748_v26 }
  0xaa   :  { %v1431_v3 = vunpack.i.h.bf16 %v1429_v2  ;;  %v1430_v4 = vunpack.i.l.bf16 %v1429_v2  ;;  %vm1023_vm4 = vmpackc.low %vm113_vm3, %vm112_vm2  ;;  %vm266_vm3 = vcmp.eq.s32.totalorder %v1771_v9, %v245_v19  ;;  %v818_v19 = vld [vmem:[%s1927_s7 + $0x70] sm:$0xff] }
  0xac   :  { %v96_v5 = vpop.permute.xlu1 %95  ;;  %v1024_v6 = vpack.c.bf16 %v1431_v3, %v1430_v4  ;;  %v239_v3 = vadd.s32 16, %v1763_v1  ;;  %v240_v4 = vadd.s32 24, %v1763_v1 }
  0xad   :  { %v99_v8 = vpop.permute.xlu0 %98  ;;  %vm114_vm8 = vcmp.eq.s32.totalorder %v96_v5, %v1748_v26 }
  0xae   :  { %1179 = vmatprep.mubr.msk.bf16.mxu0 %vm1023_vm4, %v1024_v6  ;;  %vm115_vm5 = vcmp.eq.s32.totalorder %v99_v8, %v1748_v26  ;;  %v1335_v26 = vpack.c.bf16 %v625_v25, %v624_v24  ;;  %v241_v6 = vadd.s32 32, %v1763_v1  ;;  %vm260_vm11 = vcmp.eq.s32.totalorder %v1771_v9, %v239_v3 }
  0xaf   :  { %vm1026_vm9 = vmpackc.low %vm115_vm5, %vm114_vm8  ;;  %vm261_vm12 = vcmp.eq.s32.totalorder %v1771_v9, %v240_v4  ;;  %vm267_vm4 = vcmp.eq.s32.totalorder %v1771_v9, %v246_v20  ;;  %vm269_vm8 = vcmp.eq.s32.totalorder %v1771_v9, %v248_v28  ;;  %v819_v20 = vld [vmem:[%s1927_s7 + $0x78] sm:$0xff] }
  0xb0   :  { %v1434_v10 = vpop.permute.xlu1 %1433  ;;  %1336 = vmatprep.subr.bf16.mxu0 %v1335_v26  ;;  %vm262_vm13 = vcmp.eq.s32.totalorder %v1771_v9, %v241_v6  ;;  %vm1032_vm15 = vmpackc.low %vm261_vm12, %vm260_vm11 }
  0xb1   :  { %v1436_v11 = vunpack.i.h.bf16 %v1434_v10  ;;  %v1435_v12 = vunpack.i.l.bf16 %v1434_v10  ;;  %v1439_v14 = vpop.permute.xlu0 %1438  ;;  %1338 = vmatpush3.bf16.msra.mxu0 %v1335_v26  ;;  %vm1035_vm0 = vmpackc.low %vm263_vm14, %vm262_vm13  ;;  %vm272_vm13 = vcmp.eq.s32.totalorder %v1771_v9, %v251_v39  ;;  %vm273_vm14 = vcmp.eq.s32.totalorder %v1771_v9, %v252_v40 }
  0xb2   :  { %v1441_v15 = vunpack.i.h.bf16 %v1439_v14  ;;  %v1440_v16 = vunpack.i.l.bf16 %v1439_v14  ;;  %1340 = vmatprep.subr.bf16.mxu0 %v1339_v29  ;;  %vm1041_vm6 = vmpackc.low %vm267_vm4, %vm266_vm3 }
  0xb3   :  { %v1027_v13 = vpack.c.bf16 %v1436_v11, %v1435_v12  ;;  %vm1044_vm11 = vmpackc.low %vm269_vm8, %vm268_vm7 }
  0xb4   :  { %v1030_v17 = vpack.c.bf16 %v1441_v15, %v1440_v16  ;;  %v1444_v5 = vpop.permute.xlu1 %1443  ;;  %v243_v15 = vadd.s32 48, %v1763_v1  ;;  %v244_v16 = vadd.s32 56, %v1763_v1 }
  0xb5   :  { %1180 = vmatmul.mubr.msk.bf16.gmra.mrb[12].mxu0 %vm1026_vm9, %v1027_v13  ;;  %v1449_v8 = vpop.permute.xlu0 %1448  ;;  %v1446_v10 = vunpack.i.h.bf16 %v1444_v5  ;;  %v1445_v11 = vunpack.i.l.bf16 %v1444_v5  ;;  %vm270_vm9 = vcmp.eq.s32.totalorder %v1771_v9, %v249_v31 }
  0xb6   :  { %1199 = vmatprep.mubr.msk.bf16.mxu1 %vm1029_vm10, %v1030_v17  ;;  %1342 = vmatpush3.bf16.msra.mxu0 %v1339_v29  ;;  %v1451_v12 = vunpack.i.h.bf16 %v1449_v8  ;;  %v1450_v13 = vunpack.i.l.bf16 %v1449_v8  ;;  %vm264_vm1 = vcmp.eq.s32.totalorder %v1771_v9, %v243_v15  ;;  %vm265_vm2 = vcmp.eq.s32.totalorder %v1771_v9, %v244_v16 }
  0xb7   :  { %1344 = vmatprep.subr.bf16.mxu0 %v1343_v32  ;;  %v1033_v14 = vpack.c.bf16 %v1446_v10, %v1445_v11  ;;  %vm1038_vm5 = vmpackc.low %vm265_vm2, %vm264_vm1 }
  0xb8   :  { %v1036_v17 = vpack.c.bf16 %v1451_v12, %v1450_v13  ;;  %v1454_v18 = vpop.permute.xlu1 %1453 }
  0xb9   :  { %v1459_v21 = vpop.permute.xlu0 %1458  ;;  %v1456_v22 = vunpack.i.h.bf16 %v1454_v18  ;;  %v1455_v23 = vunpack.i.l.bf16 %v1454_v18 }
  0xba   :  { %1346 = vmatpush3.bf16.msra.mxu0 %v1343_v32  ;;  %v1461_v24 = vunpack.i.h.bf16 %v1459_v21  ;;  %v1460_v25 = vunpack.i.l.bf16 %v1459_v21  ;;  %v250_v32 = vadd.s32 104, %v1763_v1  ;;  %v805_v1 = vld [vmem:[%s1927_s7 + $0x8] sm:$0xff]  ;;  %v1387_v21 = vpack.c.bf16 %v819_v20, %v818_v19 }
  0xbb   :  { %1348 = vmatprep.subr.bf16.mxu0 %v1347_v35  ;;  %v1039_v26 = vpack.c.bf16 %v1456_v22, %v1455_v23  ;;  %v1053_v22 = vld [vmem:[%s1926_s6] ss:$0 sm:$0xff] }
  0xbc   :  { %v1042_v29 = vpack.c.bf16 %v1461_v24, %v1460_v25  ;;  %v1464_v30 = vpop.permute.xlu1 %1463  ;;  %vm271_vm10 = vcmp.eq.s32.totalorder %v1771_v9, %v250_v32  ;;  %v807_v9 = vld [vmem:[%s1927_s7 + $0x18] sm:$0xff] }
  0xbd   :  { %v1469_v33 = vpop.permute.xlu0 %1468  ;;  %v1466_v34 = vunpack.i.h.bf16 %v1464_v30  ;;  %vm1047_vm12 = vmpackc.low %vm271_vm10, %vm270_vm9 }
  0xbe   :  { %1350 = vmatpush3.bf16.msra.mxu0 %v1347_v35  ;;  %v1465_v35 = vunpack.i.l.bf16 %v1464_v30  ;;  %v1471_v36 = vunpack.i.h.bf16 %v1469_v33  ;;  %v1470_v37 = vunpack.i.l.bf16 %v1469_v33 }
  0xbf   :  { %1352 = vmatprep.subr.bf16.mxu0 %v1351_v38 }
  0xc2   :  { %1354 = vmatpush3.bf16.msra.mxu0 %v1351_v38  ;;  %v1045_v38 = vpack.c.bf16 %v1466_v34, %v1465_v35 }
  0xc3   :  { %1356 = vmatprep.subr.bf16.mxu0 %v1355_v41 }
  0xc6   :  { %1358 = vmatpush3.bf16.msra.mxu0 %v1355_v41  ;;  %v1048_v41 = vpack.c.bf16 %v1471_v36, %v1470_v37 }
 0x164   :  { %v1169_v42 = vpop.f32.mrb[0].mxu0 }
 0x165   :  { %v452_v43 = vpop.f32.mrb[1].mxu0 }
 0x166   :  { %v1170_v44 = vpop.f32.mrb[2].mxu0 }
 0x167   :  { %v516_v45 = vpack.c.bf16 %v1170_v44, %v1169_v42  ;;  %v455_v46 = vpop.f32.mrb[3].mxu0  ;;  %v1474_v42 = vpop.permute.xlu1 %1473 }
 0x168   :  { %v515_v47 = vpack.c.bf16 %v455_v46, %v452_v43  ;;  %v1476_v43 = vunpack.i.h.bf16 %v1474_v42  ;;  %v1475_v44 = vunpack.i.l.bf16 %v1474_v42  ;;  %v804_v46 = vld [vmem:[%s1927_s7] sm:$0xff] }
 0x16a   :  { %1183 = vmatprep.subr.bf16.mxu1 %v515_v47 }
 0x16b   :  { %1184 = vmatpush3.bf16.msra.mxu1 %v515_v47  ;;  %v806_v47 = vld [vmem:[%s1927_s7 + $0x10] sm:$0xff] }
 0x16c   :  { %1185 = vmatprep.subr.bf16.mxu1 %v516_v45 }
 0x16f   :  { %1186 = vmatpush3.bf16.msra.mxu1 %v516_v45  ;;  %v1051_v45 = vpack.c.bf16 %v1476_v43, %v1475_v44 }
 0x170   :  { %v1173_v48 = vpop.f32.mrb[4].mxu0 }
 0x171   :  { %v468_v49 = vpop.f32.mrb[5].mxu0 }
 0x172   :  { %v1174_v50 = vpop.f32.mrb[6].mxu0 }
 0x173   :  { %v518_v51 = vpack.c.bf16 %v1174_v50, %v1173_v48  ;;  %v471_v52 = vpop.f32.mrb[7].mxu0  ;;  %v1359_v48 = vpack.c.bf16 %v805_v1, %v804_v46  ;;  %v808_v50 = vld [vmem:[%s1927_s7 + $0x20] sm:$0xff] }
 0x174   :  { %v517_v53 = vpack.c.bf16 %v471_v52, %v468_v49  ;;  %v1363_v49 = vpack.c.bf16 %v807_v9, %v806_v47 }
 0x176   :  { %1187 = vmatprep.subr.bf16.mxu1 %v517_v53 }
 0x177   :  { %1188 = vmatpush3.bf16.msra.mxu1 %v517_v53  ;;  %v810_v53 = vld [vmem:[%s1927_s7 + $0x30] sm:$0xff] }
 0x178   :  { %1189 = vmatprep.subr.bf16.mxu1 %v518_v51 }
 0x17b   :  { %1190 = vmatpush3.bf16.msra.mxu1 %v518_v51  ;;  %v809_v51 = vld [vmem:[%s1927_s7 + $0x28] sm:$0xff] }
 0x17c   :  { %v1177_v54 = vpop.f32.mrb[8].mxu0  ;;  %v1367_v52 = vpack.c.bf16 %v809_v51, %v808_v50 }
 0x17d   :  { %v484_v55 = vpop.f32.mrb[9].mxu0 }
 0x17e   :  { %v1178_v56 = vpop.f32.mrb[10].mxu0 }
 0x17f   :  { %v520_v57 = vpack.c.bf16 %v1178_v56, %v1177_v54  ;;  %v487_v58 = vpop.f32.mrb[11].mxu0  ;;  %v811_v54 = vld [vmem:[%s1927_s7 + $0x38] sm:$0xff]  ;;  %v812_v56 = vld [vmem:[%s1927_s7 + $0x40] sm:$0xff] }
 0x180   :  { %v519_v59 = vpack.c.bf16 %v487_v58, %v484_v55  ;;  %v1371_v55 = vpack.c.bf16 %v811_v54, %v810_v53 }
 0x182   :  { %1191 = vmatprep.subr.bf16.mxu1 %v519_v59 }
 0x183   :  { %1192 = vmatpush3.bf16.msra.mxu1 %v519_v59  ;;  %v814_v59 = vld [vmem:[%s1927_s7 + $0x50] sm:$0xff] }
 0x184   :  { %1193 = vmatprep.subr.bf16.mxu1 %v520_v57 }
 0x187   :  { %1194 = vmatpush3.bf16.msra.mxu1 %v520_v57  ;;  %v813_v57 = vld [vmem:[%s1927_s7 + $0x48] sm:$0xff] }
 0x188   :  { %v1181_v60 = vpop.f32.mrb[12].mxu0  ;;  %v1375_v58 = vpack.c.bf16 %v813_v57, %v812_v56 }
 0x189   :  { %v500_v61 = vpop.f32.mrb[13].mxu0 }
 0x18a   :  { %v1182_v62 = vpop.f32.mrb[14].mxu0 }
 0x18b   :  { %v522_v63 = vpack.c.bf16 %v1182_v62, %v1181_v60  ;;  %v503_v0 = vpop.f32.mrb[15].mxu0  ;;  %v815_v60 = vld [vmem:[%s1927_s7 + $0x58] sm:$0xff]  ;;  %v816_v62 = vld [vmem:[%s1927_s7 + $0x60] sm:$0xff] }
 0x18c   :  { %v521_v2 = vpack.c.bf16 %v503_v0, %v500_v61  ;;  %v1379_v61 = vpack.c.bf16 %v815_v60, %v814_v59 }
 0x18e   :  { %1195 = vmatprep.subr.bf16.mxu1 %v521_v2 }
 0x18f   :  { %1196 = vmatpush3.bf16.msra.mxu1 %v521_v2 }
 0x190   :  { %1197 = vmatprep.subr.bf16.mxu1 %v522_v63 }
 0x193   :  { %1198 = vmatpush3.bf16.msra.mxu1 %v522_v63  ;;  %v817_v63 = vld [vmem:[%s1927_s7 + $0x68] sm:$0xff] }
 0x194   :  { %1360 = vmatprep.subr.bf16.mxu1 %v1359_v48  ;;  %v1383_v0 = vpack.c.bf16 %v817_v63, %v816_v62 }
 0x196   :  { %1200 = vmatmul.mubr.msk.bf16.vlgmr.msra.gmra.mrb[0].mxu1 %vm1032_vm15, %v1033_v14  ;;  %vm1050_vm15 = vmpackc.low %vm273_vm14, %vm272_vm13 }
 0x197   :  { %1203 = vmatprep.mubr.msk.bf16.mxu1 %vm1035_vm0, %v1036_v17  ;;  %1362 = vmatpush3.bf16.msra.mxu1 %v1359_v48 }
 0x198   :  { %1364 = vmatprep.subr.bf16.mxu1 %v1363_v49 }
 0x19b   :  { %1366 = vmatpush3.bf16.msra.mxu1 %v1363_v49 }
 0x19c   :  { %1368 = vmatprep.subr.bf16.mxu1 %v1367_v52 }
 0x19e   :  { %1204 = vmatmul.mubr.msk.bf16.gmra.mrb[4].mxu1 %vm1038_vm5, %v1039_v26 }
 0x19f   :  { %1207 = vmatprep.mubr.msk.bf16.mxu1 %vm1041_vm6, %v1042_v29  ;;  %1370 = vmatpush3.bf16.msra.mxu1 %v1367_v52 }
 0x1a0   :  { %1372 = vmatprep.subr.bf16.mxu1 %v1371_v55 }
 0x1a3   :  { %1374 = vmatpush3.bf16.msra.mxu1 %v1371_v55 }
 0x1a4   :  { %1376 = vmatprep.subr.bf16.mxu1 %v1375_v58 }
 0x1a6   :  { %1208 = vmatmul.mubr.msk.bf16.gmra.mrb[8].mxu1 %vm1044_vm11, %v1045_v38 }
 0x1a7   :  { %1211 = vmatprep.mubr.msk.bf16.mxu1 %vm1047_vm12, %v1048_v41  ;;  %1378 = vmatpush3.bf16.msra.mxu1 %v1375_v58 }
 0x1a8   :  { %1380 = vmatprep.subr.bf16.mxu1 %v1379_v61 }
 0x1ab   :  { %1382 = vmatpush3.bf16.msra.mxu1 %v1379_v61 }
 0x1ac   :  { %1384 = vmatprep.subr.bf16.mxu1 %v1383_v0 }
 0x1ae   :  { %1212 = vmatmul.mubr.msk.bf16.gmra.mrb[12].mxu1 %vm1050_vm15, %v1051_v45 }
 0x1af   :  { %1386 = vmatpush3.bf16.msra.mxu1 %v1383_v0 }
 0x1b0   :  { %1388 = vmatprep.subr.bf16.mxu1 %v1387_v21 }
 0x1b3   :  { %1390 = vmatpush3.bf16.msra.mxu1 %v1387_v21 }
 0x269   :  { %v1201_v2 = vpop.f32.mrb[0].mxu1 }
 0x26a   :  { %v557_v3 = vpop.f32.mrb[1].mxu1 }
 0x26b   :  { %v1202_v4 = vpop.f32.mrb[2].mxu1  ;;  %1247 = vmatprep.mubr.f32.mxu0 %v557_v3 }
 0x26c   :  { %v560_v5 = vpop.f32.mrb[3].mxu1 }
 0x26d   :  { %1248 = vmatmul.mubr.f32.vlgmr.msra.gmra.mrb[16].mxu0 %v560_v5 }
 0x26e   :  { %1250 = vmatprep.mubr.f32.mxu0 %v1201_v2 }
 0x271   :  { %v1205_v6 = vpop.f32.mrb[4].mxu1  ;;  %1251 = vmatmul.mubr.f32.gmra.mrb[18].mxu0 %v1202_v4 }
 0x272   :  { %v573_v7 = vpop.f32.mrb[5].mxu1 }
 0x273   :  { %v1206_v8 = vpop.f32.mrb[6].mxu1  ;;  %1253 = vmatprep.mubr.f32.mxu0 %v573_v7 }
 0x274   :  { %v576_v10 = vpop.f32.mrb[7].mxu1 }
 0x275   :  { %1254 = vmatmul.mubr.f32.gmra.mrb[20].mxu0 %v576_v10 }
 0x276   :  { %1256 = vmatprep.mubr.f32.mxu0 %v1205_v6  ;;  %v1054_v6 = vld [vmem:[%s1928_s8] ss:$0 sm:$0xff]  ;;  %s1502_s8 = smov [#allocation2]  }
 0x277   :  { %s993_s17 = sshll.u32 %s1502_s8, 4  ;;  %s994_s17 = int_to_ptr.vmem [resolvable:$true] %s993_s17 }
 0x278   :  { %s1477_s18 = scalar_lea.vmem %s994_s17, 2048  ;;  %p1482_p1 = scmp.lt.s32.totalorder %s994_s17, %s994_s17 }
 0x279   :  { %v1209_v11 = vpop.f32.mrb[8].mxu1  ;;  %1257 = vmatmul.mubr.f32.gmra.mrb[22].mxu0 %v1206_v8  ;;  %p1478_p0 = scmp.ne.s32.totalorder %s994_s17, %s1477_s18  ;;  %p1483_p2 = scmp.lt.s32.totalorder %s1477_s18, %s1477_s18 }
 0x27a   :  { %v589_v12 = vpop.f32.mrb[9].mxu1 }
 0x27b   :  { %v1210_v13 = vpop.f32.mrb[10].mxu1  ;;  %1259 = vmatprep.mubr.f32.mxu0 %v589_v12  ;;  %p1484_p3 = por %p1483_p2, %p1482_p1 }
 0x27c   :  { %v592_v14 = vpop.f32.mrb[11].mxu1 }
 0x27d   :  { %1260 = vmatmul.mubr.f32.gmra.mrb[24].mxu0 %v592_v14  ;;  %p1485_p4 = pnand %p1484_p3, %p1478_p0 }
 0x27e   :  { %1262 = vmatprep.mubr.f32.mxu0 %v1209_v11 }
 0x281   :  { %v1213_v15 = vpop.f32.mrb[12].mxu1  ;;  %1263 = vmatmul.mubr.f32.gmra.mrb[26].mxu0 %v1210_v13 }
 0x282   :  { %v605_v16 = vpop.f32.mrb[13].mxu1 }
 0x283   :  { %v1214_v17 = vpop.f32.mrb[14].mxu1  ;;  %1265 = vmatprep.mubr.f32.mxu0 %v605_v16 }
 0x284   :  { %v608_v18 = vpop.f32.mrb[15].mxu1 }
 0x285   :  { %1266 = vmatmul.mubr.f32.gmra.mrb[28].mxu0 %v608_v18 }
 0x286   :  { %1268 = vmatprep.mubr.f32.mxu0 %v1213_v15 }
 0x289   :  { %1269 = vmatmul.mubr.f32.gmra.mrb[30].mxu0 %v1214_v17 }
 0x340   :  { %v1249_v23 = vpop.f32.mrb[16].mxu0 }
 0x341   :  { %v715_v24 = vadd.f32 %v1249_v23, %v1053_v22  ;;  %v709_v25 = vpop.f32.mrb[17].mxu0 }
 0x342   :  { %v710_v26 = vadd.f32 %v1053_v22, %v709_v25 }
 0x343   :  { %v789_v29 = vmax.f32 %v715_v24, 0.0 }
 0x344   :  { %v788_v27 = vmax.f32 %v710_v26, 0.0  ;;  %v1252_v28 = vpop.f32.mrb[18].mxu0 }
 0x345   :  { %v725_v30 = vadd.f32 %v1252_v28, %v1053_v22  ;;  %v719_v31 = vpop.f32.mrb[19].mxu0 }
 0x346   :  { %v720_v32 = vadd.f32 %v1053_v22, %v719_v31  ;;  %1303 = vmatprep.mubr.f32.mxu1 %v788_v27 }
 0x347   :  { %1304 = vmatmul.mubr.f32.vlgmr.msra.gmra.mrb[16].mxu1 %v789_v29  ;;  %v791_v35 = vmax.f32 %v725_v30, 0.0 }
 0x348   :  { %v790_v33 = vmax.f32 %v720_v32, 0.0  ;;  %v1255_v34 = vpop.f32.mrb[20].mxu0 }
 0x349   :  { %v735_v36 = vadd.f32 %v1255_v34, %v1053_v22  ;;  %v729_v37 = vpop.f32.mrb[21].mxu0 }
 0x34a   :  { %v730_v38 = vadd.f32 %v1053_v22, %v729_v37  ;;  %1306 = vmatprep.mubr.f32.mxu1 %v790_v33 }
 0x34b   :  { %1307 = vmatmul.mubr.f32.gmra.mrb[18].mxu1 %v791_v35  ;;  %v793_v41 = vmax.f32 %v735_v36, 0.0 }
 0x34c   :  { %v792_v39 = vmax.f32 %v730_v38, 0.0  ;;  %v1258_v40 = vpop.f32.mrb[22].mxu0 }
 0x34d   :  { %v745_v42 = vadd.f32 %v1258_v40, %v1053_v22  ;;  %v739_v43 = vpop.f32.mrb[23].mxu0 }
 0x34e   :  { %v740_v44 = vadd.f32 %v1053_v22, %v739_v43  ;;  %1309 = vmatprep.mubr.f32.mxu1 %v792_v39 }
 0x34f   :  { %1310 = vmatmul.mubr.f32.gmra.mrb[20].mxu1 %v793_v41  ;;  %v795_v1 = vmax.f32 %v745_v42, 0.0 }
 0x350   :  { %v794_v45 = vmax.f32 %v740_v44, 0.0  ;;  %v1261_v46 = vpop.f32.mrb[24].mxu0 }
 0x351   :  { %v755_v47 = vadd.f32 %v1261_v46, %v1053_v22  ;;  %v749_v48 = vpop.f32.mrb[25].mxu0 }
 0x352   :  { %v750_v9 = vadd.f32 %v1053_v22, %v749_v48  ;;  %1312 = vmatprep.mubr.f32.mxu1 %v794_v45 }
 0x353   :  { %1313 = vmatmul.mubr.f32.gmra.mrb[22].mxu1 %v795_v1  ;;  %v797_v51 = vmax.f32 %v755_v47, 0.0 }
 0x354   :  { %v796_v49 = vmax.f32 %v750_v9, 0.0  ;;  %v1264_v50 = vpop.f32.mrb[26].mxu0 }
 0x355   :  { %v765_v52 = vadd.f32 %v1264_v50, %v1053_v22  ;;  %v759_v53 = vpop.f32.mrb[27].mxu0 }
 0x356   :  { %v760_v54 = vadd.f32 %v1053_v22, %v759_v53  ;;  %1315 = vmatprep.mubr.f32.mxu1 %v796_v49 }
 0x357   :  { %1316 = vmatmul.mubr.f32.gmra.mrb[24].mxu1 %v797_v51  ;;  %v799_v57 = vmax.f32 %v765_v52, 0.0 }
 0x358   :  { %v798_v55 = vmax.f32 %v760_v54, 0.0  ;;  %v1267_v56 = vpop.f32.mrb[28].mxu0 }
 0x359   :  { %v775_v58 = vadd.f32 %v1267_v56, %v1053_v22  ;;  %v769_v59 = vpop.f32.mrb[29].mxu0 }
 0x35a   :  { %v770_v60 = vadd.f32 %v1053_v22, %v769_v59  ;;  %1318 = vmatprep.mubr.f32.mxu1 %v798_v55 }
 0x35b   :  { %1319 = vmatmul.mubr.f32.gmra.mrb[26].mxu1 %v799_v57  ;;  %v801_v63 = vmax.f32 %v775_v58, 0.0 }
 0x35c   :  { %v800_v61 = vmax.f32 %v770_v60, 0.0  ;;  %v1270_v62 = vpop.f32.mrb[30].mxu0 }
 0x35d   :  { %v785_v0 = vadd.f32 %v1270_v62, %v1053_v22  ;;  %v779_v2 = vpop.f32.mrb[31].mxu0 }
 0x35e   :  { %v780_v3 = vadd.f32 %v1053_v22, %v779_v2  ;;  %1321 = vmatprep.mubr.f32.mxu1 %v800_v61 }
 0x35f   :  { %1322 = vmatmul.mubr.f32.gmra.mrb[28].mxu1 %v801_v63  ;;  %v803_v5 = vmax.f32 %v785_v0, 0.0 }
 0x360   :  { %v802_v4 = vmax.f32 %v780_v3, 0.0 }
 0x362   :  { %1324 = vmatprep.mubr.f32.mxu1 %v802_v4 }
 0x363   :  { %1325 = vmatmul.mubr.f32.gmra.mrb[30].mxu1 %v803_v5 }
 0x41a   :  { %v1305_v7 = vpop.f32.mrb[16].mxu1 }
 0x41b   :  { %v899_v8 = vadd.f32 %v1305_v7, %v1054_v6  ;;  %v893_v10 = vpop.f32.mrb[17].mxu1 }
 0x41c   :  { %v894_v11 = vadd.f32 %v1054_v6, %v893_v10 }
 0x41d   :  { %973 = vst [vmem:[#allocation2 + $0x8] sm:$0xff] %v899_v8 }
 0x41e   :  { %972 = vst [vmem:[#allocation2] sm:$0xff] %v894_v11  ;;  %v1308_v12 = vpop.f32.mrb[18].mxu1 }
 0x41f   :  { %v909_v13 = vadd.f32 %v1308_v12, %v1054_v6  ;;  %v903_v14 = vpop.f32.mrb[19].mxu1 }
 0x420   :  { %v904_v15 = vadd.f32 %v1054_v6, %v903_v14 }
 0x421   :  { %975 = vst [vmem:[#allocation2 + $0x18] sm:$0xff] %v909_v13 }
 0x422   :  { %974 = vst [vmem:[#allocation2 + $0x10] sm:$0xff] %v904_v15  ;;  %v1311_v16 = vpop.f32.mrb[20].mxu1 }
 0x423   :  { %v919_v17 = vadd.f32 %v1311_v16, %v1054_v6  ;;  %v913_v18 = vpop.f32.mrb[21].mxu1 }
 0x424   :  { %v914_v19 = vadd.f32 %v1054_v6, %v913_v18 }
 0x425   :  { %977 = vst [vmem:[#allocation2 + $0x28] sm:$0xff] %v919_v17 }
 0x426   :  { %976 = vst [vmem:[#allocation2 + $0x20] sm:$0xff] %v914_v19  ;;  %v1314_v20 = vpop.f32.mrb[22].mxu1 }
 0x427   :  { %v929_v21 = vadd.f32 %v1314_v20, %v1054_v6  ;;  %v923_v22 = vpop.f32.mrb[23].mxu1 }
 0x428   :  { %v924_v23 = vadd.f32 %v1054_v6, %v923_v22 }
 0x429   :  { %979 = vst [vmem:[#allocation2 + $0x38] sm:$0xff] %v929_v21 }
 0x42a   :  { %978 = vst [vmem:[#allocation2 + $0x30] sm:$0xff] %v924_v23  ;;  %v1317_v24 = vpop.f32.mrb[24].mxu1 }
 0x42b   :  { %v939_v25 = vadd.f32 %v1317_v24, %v1054_v6  ;;  %v933_v26 = vpop.f32.mrb[25].mxu1 }
 0x42c   :  { %v934_v27 = vadd.f32 %v1054_v6, %v933_v26 }
 0x42d   :  { %981 = vst [vmem:[#allocation2 + $0x48] sm:$0xff] %v939_v25 }
 0x42e   :  { %980 = vst [vmem:[#allocation2 + $0x40] sm:$0xff] %v934_v27  ;;  %v1320_v28 = vpop.f32.mrb[26].mxu1 }
 0x42f   :  { %v949_v29 = vadd.f32 %v1320_v28, %v1054_v6  ;;  %v943_v30 = vpop.f32.mrb[27].mxu1 }
 0x430   :  { %v944_v31 = vadd.f32 %v1054_v6, %v943_v30 }
 0x431   :  { %983 = vst [vmem:[#allocation2 + $0x58] sm:$0xff] %v949_v29 }
 0x432   :  { %982 = vst [vmem:[#allocation2 + $0x50] sm:$0xff] %v944_v31  ;;  %v1323_v32 = vpop.f32.mrb[28].mxu1 }
 0x433   :  { %v959_v33 = vadd.f32 %v1323_v32, %v1054_v6  ;;  %v953_v34 = vpop.f32.mrb[29].mxu1 }
 0x434   :  { %v954_v35 = vadd.f32 %v1054_v6, %v953_v34 }
 0x435   :  { %985 = vst [vmem:[#allocation2 + $0x68] sm:$0xff] %v959_v33 }
 0x436   :  { %984 = vst [vmem:[#allocation2 + $0x60] sm:$0xff] %v954_v35  ;;  %v1326_v36 = vpop.f32.mrb[30].mxu1 }
 0x437   :  { %v969_v37 = vadd.f32 %v1326_v36, %v1054_v6  ;;  %v963_v38 = vpop.f32.mrb[31].mxu1 }
 0x438   :  { %v964_v39 = vadd.f32 %v1054_v6, %v963_v38 }
 0x439   :  { %987 = vst [vmem:[#allocation2 + $0x78] sm:$0xff] %v969_v37 }
 0x43a   :  { %986 = vst [vmem:[#allocation2 + $0x70] sm:$0xff] %v964_v39 }
 0x43b   :  { %1488 = shalt.err (!%p1485_p4)
}
 0x43c   :  { %s1489_s20 = scalar_lea.hbm %s1929_s9, 2048 }
 0x43d   :  { %p1490_p5 = scmp.ne.s32.totalorder %s1929_s9, %s1489_s20  ;;  %p1493_p6 = scmp.lt.u32.totalorder %s1489_s20, %s1929_s9 }
 0x43f   :  { %p1495_p7 = pnand %p1493_p6, %p1490_p5 }
 0x441   :  { %1498 = shalt.err (!%p1495_p7)
}
 0x442   :  { %s1503_s3 = smov 128   ;;  %s1504_s25 = smov 8  }
 0x443   :  { %999 = dma.vmem_to_hbm [thread:$0]  %s994_s17, 2048, %s1929_s9, [#allocation3], %s1503_s3, %s1503_s3, %s1504_s25  }
 0x444   :  { %1499 = dma.done.wait [#allocation3], 2048  }
 0x445   :  { %1500 = vsyncadd [#allocation3], 4294965248 }
 0x446   :  { %1003 = vsyncpa [#allocation3], 1 }

</bundles_post_ra>
